<compile_context>
chip_gen: v5e
topology: v5e:2x2
jax: 0.10.0
libtpu: 0.0.40
codegen_flags: <defaults>
</compile_context>

<pallas_src>
import jax
import jax.numpy as jnp
from jax.experimental import pallas as pl
from jax.experimental.pallas import tpu as pltpu


def _opn_mat_kernel(p_ref, q_ref, k_ref, o_ref):
    # p_ref, q_ref: (TN, B, E); k_ref: (TN, E, E) with k[n, e, d] = kernel[e, n, d]
    # o_ref: (B, TN)  (lane-dense output tile)
    tn, B, E = p_ref.shape
    p = p_ref[...]
    q = q_ref[...]
    k = k_ref[...]

    if B <= 8:
        # Small batch: bilinear form on the VPU/XLU, MXU stays idle (it would be
        # <1% utilized on a B x E tile anyway and the op is HBM-bound).
        rows = []
        for b in range(B):                                   # static unroll, B tiny
            pb = p[:, b, :]                                  # (TN, E)
            qb = q[:, b, :]                                  # (TN, E)
            kp = jnp.sum(k * pb[:, None, :], axis=-1)        # (TN, E): sum_d k[n,e,d]*p[n,d]
            rows.append(jnp.sum(kp * qb, axis=-1))           # (TN,):   sum_e kp[n,e]*q[n,e]
        # Accumulate the whole lane-dense (B, TN) tile and store it once.
        o_ref[...] = jnp.stack(rows, axis=0)                 # (B, TN)
    else:
        # Large batch: batched MXU matmul, contracting d with d (no k.T needed).
        kp = jax.lax.dot_general(
            p, k,
            dimension_numbers=(((2,), (2,)), ((0,), (0,))),
            preferred_element_type=jnp.float32)              # (TN, B, E)
        o_ref[...] = jnp.sum(kp * q, axis=-1).T              # (B, TN)


def _pick_tile(num_ix, B, E, vmem_budget_bytes=8 * 1024 * 1024):
    """Pick TN (pairs per block) and padded num_ix from a conservative VMEM budget.

    Budget counts double-buffered f32 inputs (p, q, kmat blocks) plus roughly one
    kmat-sized compute intermediate; 8 MiB keeps us well inside the 32 MiB scoped
    default and v7x's 64 MiB physical VMEM.
    """
    bytes_per_pair = 4 * (2 * B * E + E * E) * 2 + 4 * E * E
    tn = max(1, vmem_budget_bytes // bytes_per_pair)
    if tn >= num_ix:
        return int(num_ix), int(num_ix)          # single full block
    tn = max(128, (tn // 128) * 128)             # lane-dense multiple of 128
    n_pad = ((num_ix + tn - 1) // tn) * tn
    return int(tn), int(n_pad)


def outer_product_network_mat(x, kernel):
    """x: (B, F, E) float32; kernel: (E, num_ix, E) float32 -> (B, num_ix)."""
    x = jnp.asarray(x, jnp.float32)
    kernel = jnp.asarray(kernel, jnp.float32)
    B, F, E = x.shape
    num_ix = F * (F - 1) // 2
    assert kernel.shape == (E, num_ix, E)

    # Static pair index lists (mirrors the PyTorch loops).
    row, col = [], []
    for i in range(F - 1):
        for j in range(i + 1, F):
            row.append(i)
            col.append(j)
    row = jnp.array(row, dtype=jnp.int32)
    col = jnp.array(col, dtype=jnp.int32)

    # Pair-major layouts.  The (E, num_ix, E) weight tensor dominates HBM traffic,
    # so the (F-1)/2-fold duplication of activations into p/q is acceptable here.
    # TODO(synk): for very large B*E, gather field rows straight from a single
    # (F, B, E) copy via scalar-prefetch index_maps instead of materializing p/q.
    p = jnp.transpose(x[:, row, :], (1, 0, 2))   # (num_ix, B, E)
    q = jnp.transpose(x[:, col, :], (1, 0, 2))   # (num_ix, B, E)
    kmat = jnp.transpose(kernel, (1, 0, 2))      # (num_ix, E, E), kmat[n,e,d]=kernel[e,n,d]

    tn, n_pad = _pick_tile(num_ix, B, E)
    if n_pad != num_ix:
        pad = n_pad - num_ix
        p = jnp.pad(p, ((0, pad), (0, 0), (0, 0)))
        q = jnp.pad(q, ((0, pad), (0, 0), (0, 0)))
        kmat = jnp.pad(kmat, ((0, pad), (0, 0), (0, 0)))

    out = pl.pallas_call(
        _opn_mat_kernel,
        out_shape=jax.ShapeDtypeStruct((B, n_pad), jnp.float32),
        grid_spec=pltpu.PrefetchScalarGridSpec(
            num_scalar_prefetch=0,
            grid=(n_pad // tn,),
            in_specs=[
                pl.BlockSpec((tn, B, E), lambda n: (n, 0, 0)),
                pl.BlockSpec((tn, B, E), lambda n: (n, 0, 0)),
                pl.BlockSpec((tn, E, E), lambda n: (n, 0, 0)),
            ],
            out_specs=pl.BlockSpec((B, tn), lambda n: (0, n)),
        ),
        compiler_params=pltpu.CompilerParams(
            dimension_semantics=("parallel",)),   # pair blocks are independent
    )(p, q, kmat)

    return out[:, :num_ix]


def _reference(x, kernel):
    """Pure-JAX reference mirroring the PyTorch forward."""
    B, F, E = x.shape
    row, col = [], []
    for i in range(F - 1):
        for j in range(i + 1, F):
            row.append(i)
            col.append(j)
    p = x[:, jnp.array(row)]                                    # (B, num_ix, E)
    q = x[:, jnp.array(col)]                                    # (B, num_ix, E)
    kp = jnp.sum(p[:, None, :, :] * kernel[None], axis=-1)      # (B, E, num_ix)
    kp = jnp.transpose(kp, (0, 2, 1))                           # (B, num_ix, E)
    return jnp.sum(kp * q, axis=-1)                             # (B, num_ix)


if __name__ == "__main__":
    # Small deterministic setup: batch=2, num_fields=4, embed_dim=32.
    B, F, E = 2, 4, 32
    num_ix = F * (F - 1) // 2

    key = jax.random.PRNGKey(0)
    kx, kk = jax.random.split(key)

    x = jax.random.normal(kx, (B, F, E), dtype=jnp.float32)

    # Deterministic xavier-uniform-style init for kernel of shape (E, num_ix, E):
    # fan_in = num_ix * E, fan_out = E * E (PyTorch convention for ndim>2).
    fan_in = num_ix * E
    fan_out = E * E
    bound = (6.0 / (fan_in + fan_out)) ** 0.5
    kernel = jax.random.uniform(kk, (E, num_ix, E), dtype=jnp.float32,
                                minval=-bound, maxval=bound)

    out = outer_product_network_mat(x, kernel)
    out = jax.block_until_ready(out)

    ref = _reference(x, kernel)
    assert out.shape == (B, num_ix)
    assert jnp.allclose(out, ref, atol=1e-4, rtol=1e-4), "mismatch vs reference"

    print("KERNEL_OK")
</pallas_src>

<mosaic_0001>
module attributes {stable_mosaic.version = 11 : i64} {
  func.func @_opn_mat_kernel(%arg0: i32, %arg1: memref<6x2x32xf32, #tpu.memory_space<vmem>>, %arg2: memref<6x2x32xf32, #tpu.memory_space<vmem>>, %arg3: memref<6x32x32xf32, #tpu.memory_space<vmem>>, %arg4: memref<2x6xf32, #tpu.memory_space<vmem>>) attributes {dimension_semantics = [#tpu.dimension_semantics<parallel>], iteration_bounds = array<i64: 1>, scalar_prefetch = 0 : i64, scratch_operands = 0 : i64, tpu.core_type = #tpu.core_type<tc>, window_params = [{transform_indices = @transform_0, window_bounds = array<i64: 6, 2, 32>}, {transform_indices = @transform_1, window_bounds = array<i64: 6, 2, 32>}, {transform_indices = @transform_2, window_bounds = array<i64: 6, 32, 32>}, {transform_indices = @transform_3, window_bounds = array<i64: 2, 6>}]} {
    %c0 = arith.constant 0 : index
    %c0_0 = arith.constant 0 : index
    %c0_1 = arith.constant 0 : index
    %0 = vector.load %arg1[%c0, %c0_0, %c0_1] : memref<6x2x32xf32, #tpu.memory_space<vmem>>, vector<6x2x32xf32>
    %c0_2 = arith.constant 0 : index
    %c0_3 = arith.constant 0 : index
    %c0_4 = arith.constant 0 : index
    %1 = vector.load %arg2[%c0_2, %c0_3, %c0_4] : memref<6x2x32xf32, #tpu.memory_space<vmem>>, vector<6x2x32xf32>
    %c0_5 = arith.constant 0 : index
    %c0_6 = arith.constant 0 : index
    %c0_7 = arith.constant 0 : index
    %2 = vector.load %arg3[%c0_5, %c0_6, %c0_7] : memref<6x32x32xf32, #tpu.memory_space<vmem>>, vector<6x32x32xf32>
    %3 = vector.extract_strided_slice %0 {offsets = [0, 0, 0], sizes = [6, 1, 32], strides = [1, 1, 1]} : vector<6x2x32xf32> to vector<6x1x32xf32>
    %4 = vector.shape_cast %3 : vector<6x1x32xf32> to vector<6x32xf32>
    %5 = vector.extract_strided_slice %1 {offsets = [0, 0, 0], sizes = [6, 1, 32], strides = [1, 1, 1]} : vector<6x2x32xf32> to vector<6x1x32xf32>
    %6 = vector.shape_cast %5 : vector<6x1x32xf32> to vector<6x32xf32>
    %7 = vector.shape_cast %4 : vector<6x32xf32> to vector<6x1x32xf32>
    %8 = vector.broadcast %7 : vector<6x1x32xf32> to vector<6x32x32xf32>
    %9 = arith.mulf %2, %8 : vector<6x32x32xf32>
    %cst = arith.constant dense<0.000000e+00> : vector<6x32xf32>
    %10 = vector.multi_reduction <add>, %9, %cst [2] : vector<6x32x32xf32> to vector<6x32xf32>
    %11 = arith.mulf %10, %6 : vector<6x32xf32>
    %cst_8 = arith.constant dense<0.000000e+00> : vector<6xf32>
    %12 = vector.multi_reduction <add>, %11, %cst_8 [1] : vector<6x32xf32> to vector<6xf32>
    %13 = vector.extract_strided_slice %0 {offsets = [0, 1, 0], sizes = [6, 1, 32], strides = [1, 1, 1]} : vector<6x2x32xf32> to vector<6x1x32xf32>
    %14 = vector.shape_cast %13 : vector<6x1x32xf32> to vector<6x32xf32>
    %15 = vector.extract_strided_slice %1 {offsets = [0, 1, 0], sizes = [6, 1, 32], strides = [1, 1, 1]} : vector<6x2x32xf32> to vector<6x1x32xf32>
    %16 = vector.shape_cast %15 : vector<6x1x32xf32> to vector<6x32xf32>
    %17 = vector.shape_cast %14 : vector<6x32xf32> to vector<6x1x32xf32>
    %18 = vector.broadcast %17 : vector<6x1x32xf32> to vector<6x32x32xf32>
    %19 = arith.mulf %2, %18 : vector<6x32x32xf32>
    %cst_9 = arith.constant dense<0.000000e+00> : vector<6x32xf32>
    %20 = vector.multi_reduction <add>, %19, %cst_9 [2] : vector<6x32x32xf32> to vector<6x32xf32>
    %21 = arith.mulf %20, %16 : vector<6x32xf32>
    %cst_10 = arith.constant dense<0.000000e+00> : vector<6xf32>
    %22 = vector.multi_reduction <add>, %21, %cst_10 [1] : vector<6x32xf32> to vector<6xf32>
    %23 = vector.shape_cast %12 : vector<6xf32> to vector<1x6xf32>
    %24 = vector.shape_cast %22 : vector<6xf32> to vector<1x6xf32>
    %25 = tpu.concatenate %23, %24 in 0 : vector<1x6xf32>, vector<1x6xf32> -> vector<2x6xf32>
    %c0_11 = arith.constant 0 : index
    %c0_12 = arith.constant 0 : index
    %26 = vector.load %arg4[%c0_11, %c0_12] : memref<2x6xf32, #tpu.memory_space<vmem>>, vector<2x6xf32>
    tpu.vector_store %arg4[%c0_11, %c0_12], %25 {strides = array<i32>} : memref<2x6xf32, #tpu.memory_space<vmem>>, vector<2x6xf32>,
    return
  }
  func.func @transform_0(%arg0: i32) -> (i32, i32, i32) {
    %c0_i32 = arith.constant 0 : i32
    %c0_i32_0 = arith.constant 0 : i32
    %c0_i32_1 = arith.constant 0 : i32
    return %arg0, %c0_i32, %c0_i32_0 : i32, i32, i32
  }
  func.func @transform_1(%arg0: i32) -> (i32, i32, i32) {
    %c0_i32 = arith.constant 0 : i32
    %c0_i32_0 = arith.constant 0 : i32
    %c0_i32_1 = arith.constant 0 : i32
    return %arg0, %c0_i32, %c0_i32_0 : i32, i32, i32
  }
  func.func @transform_2(%arg0: i32) -> (i32, i32, i32) {
    %c0_i32 = arith.constant 0 : i32
    %c0_i32_0 = arith.constant 0 : i32
    %c0_i32_1 = arith.constant 0 : i32
    return %arg0, %c0_i32, %c0_i32_0 : i32, i32, i32
  }
  func.func @transform_3(%arg0: i32) -> (i32, i32) {
    %c0_i32 = arith.constant 0 : i32
    %c0_i32_0 = arith.constant 0 : i32
    return %c0_i32, %arg0 : i32, i32
  }
}

</mosaic_0001>

<bundles_post_ra>
// kernel: tpu_custom_call.1
= control target key start
LH: loop header
LB: loop body
LE: loop exit
PB: predicated region body
PF: predicated region fallthrough
CT: control target
= control target key end

     0   :  { %8 = vsyncpa [#allocation3], 0  ;;  %s1779_s0 = inlined_call_operand.hbm [shape: f32[6,2,32], index: 0, kind: input, shape index: {}]   ;;  %s1780_s1 = inlined_call_operand.hbm [shape: f32[6,2,32], index: 1, kind: input, shape index: {}]   ;;  %s1781_s2 = inlined_call_operand.hbm [shape: f32[6,32,32], index: 2, kind: input, shape index: {}]   ;;  %s1782_s3 = inlined_call_operand.hbm [shape: f32[2,6], index: 3, kind: output, shape index: {}]  }
   0x1   :  { %9 = vsyncpa [#allocation6], 0 }
   0x2   :  { %10 = vsyncpa [#allocation4], 0  ;;  %s28_s14 = sshll.u32 %s1780_s1, 4  ;;  %s1204_s15 = smov [#allocation5]   ;;  %s29_s14 = int_to_ptr.hbm [resolvable:$true] %s28_s14 }
   0x3   :  { %s30_s16 = sshll.u32 %s1204_s15, 4  ;;  %s15_s19 = sshll.u32 %s1779_s0, 4  ;;  %s31_s16 = int_to_ptr.vmem [resolvable:$true] %s30_s16  ;;  %s16_s19 = int_to_ptr.hbm [resolvable:$true] %s15_s19 }
   0x4   :  { %s1205_s20 = smov 32   ;;  %s1206_s21 = smov 2  }
   0x5   :  { %36 = dma.hbm_to_vmem [thread:$0]  %s29_s14, 192, %s31_s16, [#allocation6], %s1205_s20, %s1205_s20, %s1206_s21  }
   0x6   :  { %s1207_s22 = smov [#allocation2]   ;;  %s41_s26 = sshll.u32 %s1781_s2, 4  ;;  %s42_s26 = int_to_ptr.hbm [resolvable:$true] %s41_s26 }
   0x7   :  { %s17_s23 = sshll.u32 %s1207_s22, 4  ;;  %s1208_s1 = smov [#allocation7]   ;;  %s18_s23 = int_to_ptr.vmem [resolvable:$true] %s17_s23 }
   0x8   :  { %23 = dma.hbm_to_vmem [thread:$0]  %s16_s19, 192, %s18_s23, [#allocation3], %s1205_s20, %s1205_s20, %s1206_s21  }
   0x9   :  { %s43_s27 = sshll.u32 %s1208_s1, 4  ;;  %s1209_s28 = smov 128   ;;  %s44_s27 = int_to_ptr.vmem [resolvable:$true] %s43_s27 }
   0xa   :  { %s1210_s29 = smov 8  }
   0xb   :  { %49 = dma.hbm_to_vmem [thread:$0]  %s42_s26, 3072, %s44_s27, [#allocation6], %s1209_s28, %s1209_s28, %s1210_s29  }
   0xc   :  { %1198 = dma.done.wait [#allocation3], 192  }
   0xd   :  { %1199 = vsyncadd [#allocation3], 4294967104 }
   0xe   :  { %1200 = dma.done.wait [#allocation6], 3264  }
   0xf   :  { %1201 = vsyncadd [#allocation6], 4294964032  ;;  %v1242_v0 = vld [vmem:[#allocation2 + $0x2] sm:$0x3]  ;;  %v1244_v1 = vld [vmem:[#allocation7 + $0x20] sm:$0xff]  ;;  %vm128_vm0 = vcmask 261120   ;;  %v1783_v50 = vlaneseq }
  0x10   :  { %1801 = vst [vmem:[#allocation12_spill] sm:$0xff] %v1244_v1  ;;  %v1246_v2 = vld [vmem:[#allocation2] sm:$0x3]  ;;  %v99_v3 = vperm.slane %v1242_v0, 0  ;;  %v1249_v4 = vld [vmem:[#allocation7 + $0x10] sm:$0xff]  ;;  %v1252_v6 = vld [vmem:[#allocation7] sm:$0xff] }
  0x11   :  { %v98_v5 = vperm.slane %v1246_v2, 0  ;;  %v1257_v10 = vld [vmem:[#allocation7 + $0x28] sm:$0xff]  ;;  %v1259_v11 = vld [vmem:[#allocation7 + $0x18] sm:$0xff]  ;;  %v1275_v24 = vld [vmem:[#allocation7 + $0x40] sm:$0xff]  ;;  %v1314_v52 = vshrl.u32 %v1783_v50, 7  ;;  %vm506_vm1 = vcmask 130112  }
  0x12   :  { %v108_v7 = vmul.f32 %v99_v3, %v1244_v1  ;;  %v1264_v15 = vld [vmem:[#allocation7 + $0x8] sm:$0xff]  ;;  %v109_v16 = vmul.f32 %v99_v3, %v1257_v10  ;;  %v1277_v25 = vld [vmem:[#allocation7 + $0x38] sm:$0xff]  ;;  %v1279_v26 = vld [vmem:[#allocation7 + $0x30] sm:$0xff]  ;;  %vm510_vm2 = vcmask 195712   ;;  %vm514_vm3 = vcmask 261312   ;;  %s1212_s0 = smov [#allocation8]  }
  0x13   :  { %v106_v8 = vmul.f32 %v98_v5, %v1249_v4  ;;  %v104_v9 = vmul.f32 %v98_v5, %v1252_v6  ;;  %v107_v17 = vmul.f32 %v98_v5, %v1259_v11  ;;  %v105_v18 = vmul.f32 %v98_v5, %v1264_v15  ;;  %v1269_v19 = vld [vmem:[#allocation2 + $0x4] sm:$0x3]  ;;  %1802 = vst [vmem:[#allocation13_spill] sm:$0xff] %v1277_v25  ;;  %v1287_v33 = vld [vmem:[#allocation7 + $0x58] sm:$0xff]  ;;  %v1289_v34 = vld [vmem:[#allocation7 + $0x50] sm:$0xff]  ;;  %s1028_s2 = sshll.u32 %s1212_s0, 4  ;;  %s1029_s2 = int_to_ptr.vmem [resolvable:$true] %s1028_s2 }
  0x14   :  { %v141_v12 = vsel %vm128_vm0, %v108_v7, 0.0  ;;  %v144_v20 = vsel %vm128_vm0, %v109_v16, 0.0  ;;  %v100_v22 = vperm.slane %v1269_v19, 0  ;;  %v111_v28 = vmul.f32 %v99_v3, %v1277_v25  ;;  %1803 = vst [vmem:[#allocation14_spill] sm:$0xff] %v1289_v34  ;;  %v1291_v35 = vld [vmem:[#allocation7 + $0x48] sm:$0xff]  ;;  %v1301_v43 = vld [vmem:[#allocation7 + $0x70] sm:$0xff] }
  0x15   :  { %v135_v13 = vsel %vm128_vm0, %v106_v8, 0.0  ;;  %v129_v14 = vsel %vm128_vm0, %v104_v9, 0.0  ;;  %142 = vadd.xlane.f32.xlu2 %v141_v12  ;;  %v138_v21 = vsel %vm128_vm0, %v107_v17, 0.0  ;;  %v132_v23 = vsel %vm128_vm0, %v105_v18, 0.0  ;;  %v1295_v38 = vld [vmem:[#allocation2 + $0x6] sm:$0x3] }
  0x16   :  { %136 = vadd.xlane.f32.xlu1 %v135_v13  ;;  %130 = vadd.xlane.f32.xlu0 %v129_v14  ;;  %v112_v27 = vmul.f32 %v100_v22, %v1275_v24  ;;  %v110_v29 = vmul.f32 %v99_v3, %v1279_v26  ;;  %v150_v31 = vsel %vm128_vm0, %v111_v28, 0.0  ;;  %v115_v36 = vmul.f32 %v100_v22, %v1287_v33  ;;  %v1304_v45 = vld [vmem:[#allocation7 + $0x68] sm:$0xff]  ;;  %v1306_v46 = vld [vmem:[#allocation7 + $0x60] sm:$0xff]  ;;  %v1310_v49 = vld [vmem:[#allocation2 + $0x8] sm:$0x3]  ;;  %s1030_s5 = sshll.u32 %s1782_s3, 4  ;;  %s1031_s5 = int_to_ptr.hbm [resolvable:$true] %s1030_s5 }
  0x17   :  { %v114_v37 = vmul.f32 %v100_v22, %v1289_v34  ;;  %v113_v39 = vmul.f32 %v100_v22, %v1291_v35  ;;  %v101_v40 = vperm.slane %v1295_v38, 0  ;;  %1804 = vst [vmem:[#allocation15_spill] sm:$0xff] %v1304_v45  ;;  %v102_v54 = vperm.slane %v1310_v49, 0  ;;  %v1329_v60 = vld [vmem:[#allocation7 + $0x88] sm:$0xff]  ;;  %v1331_v61 = vld [vmem:[#allocation7 + $0x80] sm:$0xff]  ;;  %v1333_v62 = vld [vmem:[#allocation7 + $0x78] sm:$0xff] }
  0x18   :  { %v153_v30 = vsel %vm128_vm0, %v112_v27, 0.0  ;;  %v147_v32 = vsel %vm128_vm0, %v110_v29, 0.0  ;;  %v162_v41 = vsel %vm128_vm0, %v115_v36, 0.0  ;;  %v1320_v56 = vadd.s32 24, %v1314_v52  ;;  %1807 = vst [vmem:[#allocation18_spill] sm:$0xff] %v1331_v61  ;;  %v1347_v14 = vld [vmem:[#allocation7 + $0xa0] sm:$0xff] }
  0x19   :  { %v159_v42 = vsel %vm128_vm0, %v114_v37, 0.0  ;;  %v156_v44 = vsel %vm128_vm0, %v113_v39, 0.0  ;;  %v118_v47 = vmul.f32 %v101_v40, %v1301_v43  ;;  %v117_v48 = vmul.f32 %v101_v40, %v1304_v45  ;;  %v1341_v7 = vld [vmem:[#allocation2 + $0xa] sm:$0x3]  ;;  %v1349_v16 = vld [vmem:[#allocation7 + $0x98] sm:$0xff] }
  0x1a   :  { %v116_v51 = vmul.f32 %v101_v40, %v1306_v46  ;;  %1805 = vst [vmem:[#allocation16_spill] sm:$0xff] %v1320_v56  ;;  %v1323_v57 = vadd.s32 16, %v1314_v52  ;;  %v1326_v58 = vadd.s32 8, %v1314_v52  ;;  %1056 = vset.pattern.permute.xlu0 %v1320_v56  ;;  %v121_v63 = vmul.f32 %v102_v54, %v1329_v60  ;;  %v1351_v17 = vld [vmem:[#allocation7 + $0x90] sm:$0xff]  ;;  %v1359_v28 = vld [vmem:[#allocation7 + $0xb8] sm:$0xff] }
  0x1b   :  { %v171_v53 = vsel %vm128_vm0, %v118_v47, 0.0  ;;  %v168_v55 = vsel %vm128_vm0, %v117_v48, 0.0  ;;  %v120_v3 = vmul.f32 %v102_v54, %v1331_v61  ;;  %v119_v5 = vmul.f32 %v101_v40, %v1333_v62  ;;  %1808 = vst [vmem:[#allocation19_spill] sm:$0xff] %v1349_v16  ;;  %v1361_v29 = vld [vmem:[#allocation7 + $0xb0] sm:$0xff]  ;;  %v1380_v48 = vld [vmem:[#allocation5 + $0x6] sm:$0x3] }
  0x1c   :  { %1806 = vst [vmem:[#allocation17_spill] sm:$0xff] %v1323_v57  ;;  %v165_v59 = vsel %vm128_vm0, %v116_v51, 0.0  ;;  %1051 = vset.pattern.permute.xlu2 %v1323_v57  ;;  %1050 = vset.pattern.permute.xlu1 %v1326_v58  ;;  %v180_v8 = vsel %vm128_vm0, %v121_v63, 0.0  ;;  %v103_v12 = vperm.slane %v1341_v7, 0  ;;  %v282_v51 = vperm.slane %v1380_v48, 0 }
  0x1d   :  { %145 = vadd.xlane.f32.xlu2 %v144_v20  ;;  %v177_v9 = vsel %vm128_vm0, %v120_v3, 0.0  ;;  %v174_v13 = vsel %vm128_vm0, %v119_v5, 0.0  ;;  %v123_v20 = vmul.f32 %v102_v54, %v1349_v16  ;;  %1809 = vst [vmem:[#allocation20_spill] sm:$0xff] %v1361_v29  ;;  %vm551_vm4 = vcmask 1041409  }
  0x1e   :  { %139 = vadd.xlane.f32.xlu1 %v138_v21  ;;  %133 = vadd.xlane.f32.xlu0 %v132_v23  ;;  %v124_v18 = vmul.f32 %v103_v12, %v1347_v14  ;;  %v122_v21 = vmul.f32 %v102_v54, %v1351_v17  ;;  %1811 = vst [vmem:[#allocation22_spill] sm:$0xff] %v1380_v48  ;;  %vm553_vm5 = vcmask 1042434   ;;  %vm555_vm6 = vcmask 1043459  }
  0x1f   :  { %v186_v23 = vsel %vm128_vm0, %v123_v20, 0.0  ;;  %vm557_vm7 = vcmask 1044484   ;;  %vm559_vm8 = vcmask 1045509   ;;  %vm562_vm9 = vcmask 259072  }
  0x20   :  { %v189_v22 = vsel %vm128_vm0, %v124_v18, 0.0  ;;  %v183_v27 = vsel %vm128_vm0, %v122_v21, 0.0  ;;  %vm1019_vm10 = vcmask 1040384   ;;  %vm1021_vm11 = vcmask 41984  }
  0x25   :  { %154 = vadd.xlane.f32.xlu2 %v153_v30  ;;  %v1363_v30 = vld [vmem:[#allocation7 + $0xa8] sm:$0xff] }
  0x26   :  { %151 = vadd.xlane.f32.xlu1 %v150_v31  ;;  %148 = vadd.xlane.f32.xlu0 %v147_v32  ;;  %v127_v31 = vmul.f32 %v103_v12, %v1359_v28  ;;  %v126_v32 = vmul.f32 %v103_v12, %v1361_v29  ;;  %v125_v36 = vmul.f32 %v103_v12, %v1363_v30 }
  0x28   :  { %v198_v37 = vsel %vm128_vm0, %v127_v31, 0.0  ;;  %v195_v39 = vsel %vm128_vm0, %v126_v32, 0.0  ;;  %v192_v40 = vsel %vm128_vm0, %v125_v36, 0.0  ;;  %v1784_v31 = vmov 0  }
  0x2d   :  { %163 = vadd.xlane.f32.xlu2 %v162_v41  ;;  %v1371_v41 = vld [vmem:[#allocation5 + $0x2] sm:$0x3] }
  0x2e   :  { %160 = vadd.xlane.f32.xlu1 %v159_v42  ;;  %157 = vadd.xlane.f32.xlu0 %v156_v44  ;;  %1810 = vst [vmem:[#allocation21_spill] sm:$0xff] %v1371_v41  ;;  %v232_v42 = vperm.slane %v1371_v41, 0  ;;  %v1374_v44 = vld [vmem:[#allocation5] sm:$0x3] }
  0x2f   :  { %v207_v47 = vperm.slane %v1374_v44, 0 }
  0x35   :  { %172 = vadd.xlane.f32.xlu2 %v171_v53  ;;  %v1386_v53 = vld [vmem:[#allocation5 + $0x8] sm:$0x3] }
  0x36   :  { %169 = vadd.xlane.f32.xlu1 %v168_v55  ;;  %166 = vadd.xlane.f32.xlu0 %v165_v59  ;;  %1812 = vst [vmem:[#allocation23_spill] sm:$0xff] %v1386_v53  ;;  %v307_v54 = vperm.slane %v1386_v53, 0  ;;  %v1393_v59 = vld [vmem:[#allocation5 + $0x4] sm:$0x3] }
  0x37   :  { %v257_v3 = vperm.slane %v1393_v59, 0 }
  0x3d   :  { %181 = vadd.xlane.f32.xlu2 %v180_v8  ;;  %v1399_v8 = vld [vmem:[#allocation5 + $0xa] sm:$0x3] }
  0x3e   :  { %178 = vadd.xlane.f32.xlu1 %v177_v9  ;;  %175 = vadd.xlane.f32.xlu0 %v174_v13  ;;  %1813 = vst [vmem:[#allocation24_spill] sm:$0xff] %v1399_v8  ;;  %v332_v9 = vperm.slane %v1399_v8, 0 }
  0x45   :  { %190 = vadd.xlane.f32.xlu2 %v189_v22 }
  0x46   :  { %187 = vadd.xlane.f32.xlu1 %v186_v23  ;;  %184 = vadd.xlane.f32.xlu0 %v183_v27 }
  0x4d   :  { %199 = vadd.xlane.f32.xlu2 %v198_v37 }
  0x4e   :  { %196 = vadd.xlane.f32.xlu1 %v195_v39  ;;  %193 = vadd.xlane.f32.xlu0 %v192_v40 }
  0x62   :  { %255 = vperm.xlu0 %1056, %v232_v42  }
  0x65   :  { %224 = vperm.xlu2 %1051, %v207_v47  }
  0x67   :  { %218 = vperm.xlu1 %1050, %v207_v47  }
  0x6a   :  { %1057 = vset.pattern.permute.xlu0 %v1314_v52 }
  0x6d   :  { %1052 = vset.pattern.permute.xlu2 %v1320_v56 }
  0x6f   :  { %1053 = vset.pattern.permute.xlu1 %v1314_v52 }
  0x72   :  { %212 = vperm.xlu0 %1057, %v207_v47  }
  0x75   :  { %230 = vperm.xlu2 %1052, %v207_v47  }
  0x77   :  { %237 = vperm.xlu1 %1053, %v232_v42  }
  0x7a   :  { %287 = vperm.xlu0 %1057, %v282_v51  }
  0x7d   :  { %1054 = vset.pattern.permute.xlu2 %v1326_v58 }
  0x7f   :  { %1055 = vset.pattern.permute.xlu1 %v1323_v57 }
  0x82   :  { %1066 = vset.pattern.permute.xlu0 %v1326_v58 }
  0x85   :  { %243 = vperm.xlu2 %1054, %v232_v42  }
  0x87   :  { %249 = vperm.xlu1 %1055, %v232_v42  }
  0x88   :  { %v1389_v55 = vpop.xlane.xlu2 %142 }
  0x89   :  { %v131_v5 = vpop.xlane.xlu0 %130  ;;  %v137_v22 = vpop.xlane.xlu1 %136 }
  0x8a   :  { %318 = vperm.xlu0 %1066, %v307_v54  }
  0x8d   :  { %1058 = vset.pattern.permute.xlu2 %v1314_v52 }
  0x8f   :  { %1059 = vset.pattern.permute.xlu1 %v1326_v58 }
  0x90   :  { %v1395_v63 = vpop.xlane.xlu2 %145 }
  0x91   :  { %v134_v13 = vpop.xlane.xlu0 %133  ;;  %v140_v32 = vpop.xlane.xlu1 %139 }
  0x92   :  { %1071 = vset.pattern.permute.xlu0 %v1323_v57 }
  0x95   :  { %262 = vperm.xlu2 %1058, %v257_v3  }
  0x97   :  { %268 = vperm.xlu1 %1059, %v257_v3  }
  0x98   :  { %v155_v12 = vpop.xlane.xlu2 %154 }
  0x99   :  { %v1406_v20 = vpop.xlane.xlu0 %148  ;;  %v152_v39 = vpop.xlane.xlu1 %151 }
  0x9a   :  { %349 = vperm.xlu0 %1071, %v332_v9  }
  0x9d   :  { %1060 = vset.pattern.permute.xlu2 %v1323_v57 }
  0x9f   :  { %1061 = vset.pattern.permute.xlu1 %v1320_v56 }
  0xa0   :  { %v1404_v18 = vpop.xlane.xlu2 %163 }
  0xa1   :  { %v1412_v23 = vpop.xlane.xlu0 %157  ;;  %v161_v47 = vpop.xlane.xlu1 %160 }
  0xa2   :  { %1075 = vset.pattern.permute.xlu0 %v1784_v31 }
  0xa5   :  { %274 = vperm.xlu2 %1060, %v257_v3  }
  0xa7   :  { %280 = vperm.xlu1 %1061, %v257_v3  }
  0xa8   :  { %v1408_v21 = vpop.xlane.xlu2 %172 }
  0xa9   :  { %v1419_v37 = vpop.xlane.xlu0 %166  ;;  %v170_v29 = vpop.xlane.xlu1 %169 }
  0xad   :  { %1062 = vset.pattern.permute.xlu2 %v1326_v58 }
  0xaf   :  { %1063 = vset.pattern.permute.xlu1 %v1323_v57 }
  0xb0   :  { %v1414_v27 = vpop.xlane.xlu2 %181 }
  0xb1   :  { %v1425_v42 = vpop.xlane.xlu0 %175  ;;  %v179_v61 = vpop.xlane.xlu1 %178 }
  0xb5   :  { %293 = vperm.xlu2 %1062, %v282_v51  }
  0xb7   :  { %299 = vperm.xlu1 %1063, %v282_v51  }
  0xb8   :  { %v1417_v36 = vpop.xlane.xlu2 %190 }
  0xb9   :  { %v1428_v50 = vpop.xlane.xlu0 %184  ;;  %v1435_v45 = vpop.xlane.xlu1 %187 }
  0xbd   :  { %1064 = vset.pattern.permute.xlu2 %v1320_v56 }
  0xbf   :  { %1065 = vset.pattern.permute.xlu1 %v1314_v52 }
  0xc0   :  { %v1423_v40 = vpop.xlane.xlu2 %199 }
  0xc1   :  { %v1431_v16 = vpop.xlane.xlu0 %193 }
  0xc5   :  { %305 = vperm.xlu2 %1064, %v282_v51  }
  0xc7   :  { %312 = vperm.xlu1 %1065, %v307_v54  }
  0xc8   :  { %v225_v3 = vpop.permute.xlu2 %224 }
  0xc9   :  { %v383_v25 = vmul.f32 %v225_v3, %v137_v22 }
  0xcd   :  { %1067 = vset.pattern.permute.xlu2 %v1323_v57 }
  0xcf   :  { %1068 = vset.pattern.permute.xlu1 %v1320_v56 }
  0xd0   :  { %v231_v31 = vpop.permute.xlu2 %230 }
  0xd1   :  { %v384_v8 = vmul.f32 %v231_v31, %v140_v32  ;;  %v197_v31 = vpop.xlane.xlu1 %196 }
  0xd3   :  { %439 = vperm.xlu0 %1075, %v384_v8   ;;  %v1814_v8 = vmov 0  }
  0xd4   :  { %v256_v51 = vpop.permute.xlu0 %255 }
  0xd5   :  { %324 = vperm.xlu2 %1067, %v307_v54  }
  0xd7   :  { %330 = vperm.xlu1 %1068, %v307_v54  }
  0xd9   :  { %v219_v48 = vpop.permute.xlu1 %218 }
  0xda   :  { %v382_v1 = vmul.f32 %v219_v48, %v134_v13 }
  0xdd   :  { %1069 = vset.pattern.permute.xlu2 %v1314_v52 }
  0xdf   :  { %1070 = vset.pattern.permute.xlu1 %v1326_v58  ;;  %v244_v53 = vpop.permute.xlu2 %243 }
  0xe0   :  { %v386_v57 = vmul.f32 %v244_v53, %v1395_v63 }
  0xe4   :  { %v213_v41 = vpop.permute.xlu0 %212 }
  0xe5   :  { %337 = vperm.xlu2 %1069, %v332_v9   ;;  %v381_v34 = vmul.f32 %v213_v41, %v131_v5 }
  0xe7   :  { %343 = vperm.xlu1 %1070, %v332_v9  }
  0xe9   :  { %v238_v41 = vpop.permute.xlu1 %237 }
  0xea   :  { %v385_v5 = vmul.f32 %v238_v41, %v1389_v55 }
  0xed   :  { %1072 = vset.pattern.permute.xlu2 %v1320_v56  ;;  %v388_v56 = vmul.f32 %v256_v51, %v152_v39 }
  0xef   :  { %1073 = vset.pattern.permute.xlu1 %v1814_v8  ;;  %v263_v54 = vpop.permute.xlu2 %262 }
  0xf0   :  { %430 = vperm.xlu1 %1073, %v381_v34   ;;  %v389_v32 = vmul.f32 %v263_v54, %v155_v12 }
  0xf2   :  { %454 = vperm.xlu0 %1075, %v389_v32  }
  0xf5   :  { %355 = vperm.xlu2 %1072, %v332_v9  }
  0xf8   :  { %436 = vperm.xlu1 %1073, %v383_v25  }
  0xf9   :  { %v250_v34 = vpop.permute.xlu1 %249 }
  0xfa   :  { %v387_v22 = vmul.f32 %v250_v34, %v1406_v20 }
  0xfd   :  { %1074 = vset.pattern.permute.xlu2 %v1814_v8 }
  0xfe   :  { %433 = vperm.xlu2 %1074, %v382_v1  }
  0xff   :  { %v275_v12 = vpop.permute.xlu2 %274 }
 0x100   :  { %445 = vperm.xlu1 %1073, %v386_v57   ;;  %v391_v9 = vmul.f32 %v275_v12, %v161_v47  ;;  %v288_v57 = vpop.permute.xlu0 %287 }
 0x106   :  { %442 = vperm.xlu2 %1074, %v385_v5  }
 0x108   :  { %451 = vperm.xlu1 %1073, %v388_v56   ;;  %v393_v56 = vmul.f32 %v288_v57, %v1419_v37 }
 0x109   :  { %v269_v25 = vpop.permute.xlu1 %268 }
 0x10a   :  { %v390_v53 = vmul.f32 %v269_v25, %v1412_v23  ;;  %v319_v23 = vpop.permute.xlu0 %318  ;;  %v1479_v25 = vperm.slane %v1269_v19, 1 }
 0x10b   :  { %v398_v51 = vmul.f32 %v319_v23, %v1414_v27 }
 0x10c   :  { %v583_v19 = vmul.f32 %v1479_v25, %v1287_v33  ;;  %v581_v57 = vmul.f32 %v1479_v25, %v1291_v35 }
 0x10e   :  { %448 = vperm.xlu2 %1074, %v387_v22  }
 0x10f   :  { %v294_v48 = vpop.permute.xlu2 %293 }
 0x110   :  { %460 = vperm.xlu1 %1073, %v391_v9   ;;  %v394_v63 = vmul.f32 %v294_v48, %v170_v29 }
 0x116   :  { %457 = vperm.xlu2 %1074, %v390_v53   ;;  %v580_v53 = vmul.f32 %v1479_v25, %v1275_v24  ;;  %v629_v24 = vsel %vm128_vm0, %v583_v19, 0.0 }
 0x118   :  { %469 = vperm.xlu1 %1073, %v394_v63  }
 0x119   :  { %v281_v1 = vpop.permute.xlu1 %280 }
 0x11a   :  { %v392_v55 = vmul.f32 %v281_v1, %v1404_v18 }
 0x11c   :  { %463 = vperm.xlu0 %1075, %v392_v55  }
 0x11e   :  { %466 = vperm.xlu2 %1074, %v393_v56   ;;  %v1498_v56 = vperm.slane %v1295_v38, 1  ;;  %v1513_v38 = vperm.slane %v1310_v49, 1 }
 0x11f   :  { %v306_v13 = vpop.permute.xlu2 %305 }
 0x120   :  { %v396_v20 = vmul.f32 %v306_v13, %v1425_v42  ;;  %v586_v33 = vmul.f32 %v1498_v56, %v1301_v43  ;;  %v584_v35 = vmul.f32 %v1498_v56, %v1306_v46  ;;  %v589_v43 = vmul.f32 %v1513_v38, %v1329_v60 }
 0x121   :  { %v587_v46 = vmul.f32 %v1498_v56, %v1333_v62  ;;  %v590_v62 = vmul.f32 %v1513_v38, %v1351_v17  ;;  %v1815_v17 = vlaneseq }
 0x126   :  { %475 = vperm.xlu2 %1074, %v396_v20   ;;  %v623_v20 = vsel %vm128_vm0, %v581_v57, 0.0 }
 0x129   :  { %v300_v39 = vpop.permute.xlu1 %299 }
 0x12a   :  { %v395_v47 = vmul.f32 %v300_v39, %v1408_v21  ;;  %v350_v21 = vpop.permute.xlu0 %349 }
 0x12c   :  { %472 = vperm.xlu0 %1075, %v395_v47   ;;  %v638_v47 = vsel %vm128_vm0, %v586_v33, 0.0 }
 0x12f   :  { %v325_v29 = vpop.permute.xlu2 %324 }
 0x130   :  { %v399_v3 = vmul.f32 %v325_v29, %v1428_v50  ;;  %v403_v50 = vmul.f32 %v350_v21, %v197_v31  ;;  %v632_v29 = vsel %vm128_vm0, %v584_v35, 0.0 }
 0x132   :  { %484 = vperm.xlu2 %1074, %v399_v3  }
 0x134   :  { %481 = vperm.xlu0 %1075, %v398_v51   ;;  %v647_v51 = vsel %vm128_vm0, %v589_v43, 0.0 }
 0x139   :  { %v313_v18 = vpop.permute.xlu1 %312 }
 0x13a   :  { %v397_v54 = vmul.f32 %v313_v18, %v179_v61  ;;  %v1526_v18 = vperm.slane %v1341_v7, 1  ;;  %v650_v7 = vsel %vm128_vm0, %v590_v62, 0.0 }
 0x13c   :  { %478 = vperm.xlu1 %1073, %v397_v54   ;;  %v641_v54 = vsel %vm128_vm0, %v587_v46, 0.0 }
 0x13f   :  { %v338_v37 = vpop.permute.xlu2 %337 }
 0x140   :  { %v401_v32 = vmul.f32 %v338_v37, %v1417_v36 }
 0x142   :  { %490 = vperm.xlu0 %1075, %v401_v32   ;;  %v592_v32 = vmul.f32 %v1526_v18, %v1347_v14 }
 0x149   :  { %v331_v42 = vpop.permute.xlu1 %330 }
 0x14a   :  { %v400_v41 = vmul.f32 %v331_v42, %v1435_v45  ;;  %v1458_v45 = vperm.slane %v1246_v2, 1  ;;  %v656_v42 = vsel %vm128_vm0, %v592_v32, 0.0 }
 0x14c   :  { %487 = vperm.xlu1 %1073, %v400_v41   ;;  %v573_v61 = vmul.f32 %v1458_v45, %v1264_v15  ;;  %v572_v36 = vmul.f32 %v1458_v45, %v1252_v6  ;;  %v575_v15 = vmul.f32 %v1458_v45, %v1259_v11  ;;  %v620_v11 = vsel %vm128_vm0, %v580_v53, 0.0 }
 0x14e   :  { %v596_v31 = vsel %vm128_vm0, %v572_v36, 0.0 }
 0x14f   :  { %v356_v5 = vpop.permute.xlu2 %355 }
 0x150   :  { %v404_v34 = vmul.f32 %v356_v5, %v1423_v40  ;;  %v599_v40 = vsel %vm128_vm0, %v573_v61, 0.0  ;;  %v595_v5 = vmul.f32 %v1526_v18, %v1359_v28 }
 0x152   :  { %499 = vperm.xlu0 %1075, %v404_v34   ;;  %v593_v34 = vmul.f32 %v1526_v18, %v1363_v30  ;;  %v665_v14 = vsel %vm128_vm0, %v595_v5, 0.0 }
 0x154   :  { %496 = vperm.xlu1 %1073, %v403_v50  }
 0x158   :  { %v1473_v9 = vpop.permute.xlu2 %433 }
 0x159   :  { %v344_v27 = vpop.permute.xlu1 %343 }
 0x15a   :  { %v402_v12 = vmul.f32 %v344_v27, %v1431_v16  ;;  %1084 = vset.pattern.permute.xlu0 %v1326_v58  ;;  %v1466_v16 = vperm.slane %v1242_v0, 1  ;;  %v605_v0 = vsel %vm128_vm0, %v575_v15, 0.0  ;;  %v659_v27 = vsel %vm128_vm0, %v593_v34, 0.0 }
 0x15c   :  { %493 = vperm.xlu2 %1074, %v402_v12   ;;  %1076 = vset.pattern.permute.xlu1 %v1314_v52  ;;  %v577_v2 = vmul.f32 %v1466_v16, %v1257_v10  ;;  %v578_v10 = vmul.f32 %v1466_v16, %v1279_v26  ;;  %v1500_v26 = vpop.permute.xlu0 %439  ;;  %v1546_v12 = vand.u32 127, %v1815_v17 }
 0x15e   :  { %v611_v6 = vsel %vm128_vm0, %v577_v2, 0.0  ;;  %v614_v1 = vsel %vm128_vm0, %v578_v10, 0.0  ;;  %v1552_v28 = vadd.s32 4294967288, %v1546_v12  ;;  %v1555_v30 = vadd.s32 4294967280, %v1546_v12 }
 0x160   :  { %v1488_v63 = vpop.permute.xlu2 %442 }
 0x162   :  { %v1469_v22 = vpop.permute.xlu1 %430 }
 0x164   :  { %1077 = vset.pattern.permute.xlu2 %v1326_v58  ;;  %v1515_v23 = vpop.permute.xlu0 %454 }
 0x168   :  { %v1502_v13 = vpop.permute.xlu2 %448 }
 0x16a   :  { %v1482_v48 = vpop.permute.xlu1 %436 }
 0x16b   :  { %v509_v53 = vperm.slane %v1482_v48, %v1555_v30 }
 0x170   :  { %v1518_v3 = vpop.permute.xlu2 %457 }
 0x172   :  { %v446_v55 = vpop.permute.xlu1 %445 }
 0x173   :  { %v517_v2 = vperm.slane %v446_v55, %v1552_v28  ;;  %v519_v55 = vperm.slane %v1502_v13, %v1555_v30 }
 0x178   :  { %v467_v60 = vpop.permute.xlu2 %466 }
 0x17a   :  { %v1509_v39 = vpop.permute.xlu1 %451 }
 0x17c   :  { %600 = vadd.xlane.f32.xlu0 %v599_v40  ;;  %v1549_v40 = vadd.s32 4294967272, %v1546_v12 }
 0x17e   :  { %597 = vadd.xlane.f32.xlu1 %v596_v31  ;;  %v513_v15 = vperm.slane %v1500_v26, %v1549_v40  ;;  %v521_v19 = vperm.slane %v1509_v39, %v1549_v40  ;;  %v523_v26 = vperm.slane %v1515_v23, %v1546_v12 }
 0x180   :  { %v476_v50 = vpop.permute.xlu2 %475 }
 0x181   :  { %v535_v46 = vperm.slane %v476_v50, %v1549_v40 }
 0x182   :  { %v1531_v37 = vpop.permute.xlu1 %460 }
 0x183   :  { %v526_v33 = vperm.slane %v1531_v37, %v1555_v30 }
 0x184   :  { %612 = vadd.xlane.f32.xlu0 %v611_v6  ;;  %v516_v6 = vperm.slane %v1488_v63, %v1546_v12 }
 0x186   :  { %606 = vadd.xlane.f32.xlu1 %v605_v0  ;;  %v503_v0 = vperm.slane %v1469_v22, %v1546_v12  ;;  %v505_v22 = vperm.slane %v1473_v9, %v1552_v28 }
 0x188   :  { %v507_v35 = vsel %vm506_vm1, %v505_v22, %v503_v0  ;;  %v1818_v22 = vld [vmem:[#allocation16_spill] sm:$0xff] }
 0x18a   :  { %v470_v21 = vpop.permute.xlu1 %469 }
 0x18b   :  { %v531_v63 = vperm.slane %v470_v21, %v1552_v28 }
 0x18c   :  { %621 = vadd.xlane.f32.xlu0 %v620_v11  ;;  %v485_v31 = vpop.permute.xlu2 %484  ;;  %v524_v11 = vperm.slane %v1518_v3, %v1552_v28 }
 0x18d   :  { %v540_v32 = vperm.slane %v485_v31, %v1555_v30 }
 0x18e   :  { %615 = vadd.xlane.f32.xlu1 %v614_v1  ;;  %v1528_v49 = vpop.permute.xlu0 %463  ;;  %v518_v1 = vsel %vm506_vm1, %v517_v2, %v516_v6  ;;  %v525_v23 = vsel %vm506_vm1, %v524_v11, %v523_v26  ;;  %v574_v11 = vmul.f32 %v1458_v45, %v1249_v4  ;;  %v1821_v26 = vld [vmem:[#allocation14_spill] sm:$0xff] }
 0x18f   :  { %v520_v9 = vsel %vm510_vm2, %v519_v55, %v518_v1  ;;  %v528_v13 = vperm.slane %v1528_v49, %v1549_v40  ;;  %v527_v49 = vsel %vm510_vm2, %v526_v33, %v525_v23  ;;  %v1816_v1 = vld [vmem:[#allocation17_spill] sm:$0xff]  ;;  %v1819_v55 = vld [vmem:[#allocation22_spill] sm:$0xff] }
 0x190   :  { %v522_v3 = vsel %vm514_vm3, %v521_v19, %v520_v9  ;;  %v602_v19 = vsel %vm128_vm0, %v574_v11, 0.0  ;;  %v1825_v23 = vld [vmem:[#allocation18_spill] sm:$0xff] }
 0x194   :  { %630 = vadd.xlane.f32.xlu0 %v629_v24 }
 0x196   :  { %624 = vadd.xlane.f32.xlu1 %v623_v20  ;;  %v530_v20 = vperm.slane %v467_v60, %v1546_v12 }
 0x198   :  { %v532_v43 = vsel %vm506_vm1, %v531_v63, %v530_v20  ;;  %v1817_v63 = vld [vmem:[#allocation12_spill] sm:$0xff]  ;;  %v582_v20 = vmul.f32 %v1479_v25, %v1821_v26 }
 0x19a   :  { %v626_v33 = vsel %vm128_vm0, %v582_v20, 0.0 }
 0x19c   :  { %639 = vadd.xlane.f32.xlu0 %v638_v47 }
 0x19e   :  { %633 = vadd.xlane.f32.xlu1 %v632_v29  ;;  %v473_v41 = vpop.permute.xlu0 %472  ;;  %v511_v29 = vsel %vm510_vm2, %v509_v53, %v507_v35  ;;  %v668_v53 = vperm.slane %v1374_v44, 1  ;;  %v1822_v35 = vld [vmem:[#allocation21_spill] sm:$0xff] }
 0x19f   :  { %v533_v48 = vperm.slane %v473_v41, %v1555_v30  ;;  %v515_v21 = vsel %vm514_vm3, %v513_v15, %v511_v29  ;;  %v693_v9 = vperm.slane %v1822_v35, 1 }
 0x1a4   :  { %648 = vadd.xlane.f32.xlu0 %v647_v51  ;;  %v534_v51 = vsel %vm510_vm2, %v533_v48, %v532_v43  ;;  %v1630_v48 = vperm.slane %v1819_v55, 1 }
 0x1a5   :  { %v536_v5 = vsel %vm514_vm3, %v535_v46, %v534_v51 }
 0x1a6   :  { %642 = vadd.xlane.f32.xlu1 %v641_v54  ;;  %v482_v61 = vpop.permute.xlu0 %481 }
 0x1a7   :  { %v538_v39 = vperm.slane %v482_v61, %v1552_v28 }
 0x1ac   :  { %657 = vadd.xlane.f32.xlu0 %v656_v42  ;;  %v529_v42 = vsel %vm514_vm3, %v528_v13, %v527_v49  ;;  %v1823_v13 = vld [vmem:[#allocation23_spill] sm:$0xff]  ;;  %v1827_v49 = vld [vmem:[#allocation20_spill] sm:$0xff] }
 0x1ae   :  { %651 = vadd.xlane.f32.xlu1 %v650_v7  ;;  %v479_v36 = vpop.permute.xlu1 %478  ;;  %v1602_v7 = vperm.slane %v1393_v59, 1 }
 0x1af   :  { %v537_v24 = vperm.slane %v479_v36, %v1546_v12 }
 0x1b1   :  { %v539_v54 = vsel %vm506_vm1, %v538_v39, %v537_v24  ;;  %v1820_v24 = vld [vmem:[#allocation13_spill] sm:$0xff]  ;;  %v1824_v39 = vld [vmem:[#allocation15_spill] sm:$0xff] }
 0x1b2   :  { %v541_v34 = vsel %vm510_vm2, %v540_v32, %v539_v54  ;;  %v579_v4 = vmul.f32 %v1466_v16, %v1820_v24  ;;  %v594_v32 = vmul.f32 %v1526_v18, %v1827_v49 }
 0x1b4   :  { %666 = vadd.xlane.f32.xlu0 %v665_v14  ;;  %v491_v10 = vpop.permute.xlu0 %490  ;;  %v552_v14 = vsel %vm551_vm4, %v522_v3, %v515_v21  ;;  %v617_v45 = vsel %vm128_vm0, %v579_v4, 0.0  ;;  %v588_v3 = vmul.f32 %v1513_v38, %v1825_v23 }
 0x1b5   :  { %v544_v60 = vperm.slane %v491_v10, %v1546_v12  ;;  %v554_v61 = vsel %vm553_vm5, %v529_v42, %v552_v14  ;;  %v1828_v14 = vld [vmem:[#allocation24_spill] sm:$0xff] }
 0x1b6   :  { %660 = vadd.xlane.f32.xlu1 %v659_v27  ;;  %v494_v47 = vpop.permute.xlu2 %493  ;;  %v556_v2 = vsel %vm555_vm6, %v536_v5, %v554_v61  ;;  %v644_v43 = vsel %vm128_vm0, %v588_v3, 0.0 }
 0x1b7   :  { %v545_v62 = vperm.slane %v494_v47, %v1552_v28  ;;  %v585_v47 = vmul.f32 %v1498_v56, %v1824_v39  ;;  %v1826_v56 = vld [vmem:[#allocation19_spill] sm:$0xff] }
 0x1b8   :  { %v591_v51 = vmul.f32 %v1513_v38, %v1826_v56 }
 0x1b9   :  { %v546_v59 = vsel %vm506_vm1, %v545_v62, %v544_v60  ;;  %v635_v25 = vsel %vm128_vm0, %v585_v47, 0.0  ;;  %v662_v60 = vsel %vm128_vm0, %v594_v32, 0.0 }
 0x1ba   :  { %v653_v54 = vsel %vm128_vm0, %v591_v51, 0.0 }
 0x1be   :  { %v488_v57 = vpop.permute.xlu1 %487 }
 0x1bf   :  { %v542_v37 = vperm.slane %v488_v57, %v1549_v40  ;;  %v576_v57 = vmul.f32 %v1466_v16, %v1817_v63  ;;  %v1643_v16 = vperm.slane %v1823_v13, 1 }
 0x1c1   :  { %v543_v27 = vsel %vm514_vm3, %v542_v37, %v541_v34  ;;  %v608_v44 = vsel %vm128_vm0, %v576_v57, 0.0 }
 0x1c2   :  { %v558_v6 = vsel %vm557_vm7, %v543_v27, %v556_v2  ;;  %v793_v27 = vperm.slane %v1828_v14, 1 }
 0x1c4   :  { %v500_v41 = vpop.permute.xlu0 %499 }
 0x1c5   :  { %v549_v36 = vperm.slane %v500_v41, %v1549_v40 }
 0x1c6   :  { %v497_v50 = vpop.permute.xlu1 %496 }
 0x1c7   :  { %v547_v17 = vperm.slane %v497_v50, %v1555_v30 }
 0x1c8   :  { %729 = vperm.xlu0 %1084, %v1602_v7  }
 0x1c9   :  { %v548_v31 = vsel %vm510_vm2, %v547_v17, %v546_v59 }
 0x1ca   :  { %v550_v15 = vsel %vm514_vm3, %v549_v36, %v548_v31 }
 0x1cb   :  { %v560_v0 = vsel %vm559_vm8, %v550_v15, %v558_v6 }
 0x1cc   :  { %v563_v10 = vsel %vm562_vm9, %v560_v0, 0.0 }
 0x1cd   :  { %564 = vadd.xlane.f32.xlu2 %v563_v10 }
 0x1cf   :  { %673 = vperm.xlu1 %1076, %v668_v53  }
 0x1d0   :  { %1085 = vset.pattern.permute.xlu0 %v1816_v1 }
 0x1d5   :  { %603 = vadd.xlane.f32.xlu2 %v602_v19 }
 0x1d7   :  { %1078 = vset.pattern.permute.xlu1 %v1818_v22 }
 0x1d8   :  { %685 = vperm.xlu0 %1085, %v668_v53  }
 0x1dd   :  { %609 = vadd.xlane.f32.xlu2 %v608_v44 }
 0x1df   :  { %691 = vperm.xlu1 %1078, %v668_v53  }
 0x1e0   :  { %760 = vperm.xlu0 %1085, %v1630_v48  }
 0x1e5   :  { %618 = vadd.xlane.f32.xlu2 %v617_v45 }
 0x1e7   :  { %1080 = vset.pattern.permute.xlu1 %v1326_v58 }
 0x1e8   :  { %1094 = vset.pattern.permute.xlu0 %v1818_v22 }
 0x1ed   :  { %627 = vadd.xlane.f32.xlu2 %v626_v33 }
 0x1ef   :  { %704 = vperm.xlu1 %1080, %v693_v9   ;;  %v601_v61 = vpop.xlane.xlu0 %600 }
 0x1f0   :  { %791 = vperm.xlu0 %1094, %v1643_v16  }
 0x1f1   :  { %v598_v29 = vpop.xlane.xlu1 %597 }
 0x1f5   :  { %636 = vadd.xlane.f32.xlu2 %v635_v25 }
 0x1f7   :  { %1082 = vset.pattern.permute.xlu1 %v1818_v22  ;;  %v613_v2 = vpop.xlane.xlu0 %612 }
 0x1f8   :  { %1099 = vset.pattern.permute.xlu0 %v1814_v8 }
 0x1f9   :  { %v1654_v46 = vpop.xlane.xlu1 %606 }
 0x1fd   :  { %645 = vadd.xlane.f32.xlu2 %v644_v43 }
 0x1ff   :  { %716 = vperm.xlu1 %1082, %v693_v9  }
 0x201   :  { %v1659_v37 = vpop.xlane.xlu1 %615 }
 0x205   :  { %654 = vadd.xlane.f32.xlu2 %v653_v54 }
 0x207   :  { %1086 = vset.pattern.permute.xlu1 %v1816_v1 }
 0x209   :  { %v1666_v62 = vpop.xlane.xlu1 %624 }
 0x20d   :  { %663 = vadd.xlane.f32.xlu2 %v662_v60 }
 0x20f   :  { %735 = vperm.xlu1 %1086, %v1602_v7  }
 0x211   :  { %v1669_v38 = vpop.xlane.xlu1 %633 }
 0x217   :  { %1088 = vset.pattern.permute.xlu1 %v1314_v52 }
 0x219   :  { %v1672_v42 = vpop.xlane.xlu1 %642 }
 0x21f   :  { %748 = vperm.xlu1 %1088, %v1630_v48  }
 0x221   :  { %v1676_v18 = vpop.xlane.xlu1 %651 }
 0x225   :  { %679 = vperm.xlu2 %1077, %v668_v53   ;;  %v622_v53 = vpop.xlane.xlu0 %621 }
 0x227   :  { %1090 = vset.pattern.permute.xlu1 %v1818_v22 }
 0x229   :  { %v1680_v41 = vpop.xlane.xlu1 %660 }
 0x22d   :  { %1079 = vset.pattern.permute.xlu2 %v1314_v52  ;;  %v631_v11 = vpop.xlane.xlu0 %630 }
 0x22f   :  { %766 = vperm.xlu1 %1090, %v1630_v48  }
 0x235   :  { %698 = vperm.xlu2 %1079, %v693_v9   ;;  %v640_v63 = vpop.xlane.xlu0 %639 }
 0x237   :  { %1092 = vset.pattern.permute.xlu1 %v1326_v58 }
 0x23d   :  { %1081 = vset.pattern.permute.xlu2 %v1816_v1  ;;  %v649_v44 = vpop.xlane.xlu0 %648 }
 0x23f   :  { %779 = vperm.xlu1 %1092, %v1643_v16  }
 0x240   :  { %v1684_v21 = vpop.xlane.xlu2 %564 }
 0x241   :  { %v674_v5 = vpop.permute.xlu1 %673 }
 0x242   :  { %v842_v34 = vmul.f32 %v674_v5, %v598_v29 }
 0x244   :  { %891 = vperm.xlu0 %1099, %v842_v34  }
 0x245   :  { %710 = vperm.xlu2 %1081, %v693_v9   ;;  %v658_v4 = vpop.xlane.xlu0 %657 }
 0x247   :  { %1095 = vset.pattern.permute.xlu1 %v1314_v52 }
 0x248   :  { %v604_v50 = vpop.xlane.xlu2 %603 }
 0x24d   :  { %1083 = vset.pattern.permute.xlu2 %v1314_v52  ;;  %v1709_v45 = vpop.xlane.xlu0 %666 }
 0x24f   :  { %798 = vperm.xlu1 %1095, %v793_v27  }
 0x250   :  { %v610_v17 = vpop.xlane.xlu2 %609 }
 0x251   :  { %v692_v36 = vpop.permute.xlu1 %691 }
 0x252   :  { %v845_v24 = vmul.f32 %v692_v36, %v1654_v46 }
 0x255   :  { %723 = vperm.xlu2 %1083, %v1602_v7   ;;  %v730_v33 = vpop.permute.xlu0 %729 }
 0x257   :  { %1097 = vset.pattern.permute.xlu1 %v1816_v1 }
 0x258   :  { %v1691_v59 = vpop.xlane.xlu2 %618 }
 0x25d   :  { %1087 = vset.pattern.permute.xlu2 %v1818_v22  ;;  %v686_v39 = vpop.permute.xlu0 %685 }
 0x25e   :  { %v844_v47 = vmul.f32 %v686_v39, %v604_v50 }
 0x25f   :  { %810 = vperm.xlu1 %1097, %v793_v27  }
 0x260   :  { %v1694_v31 = vpop.xlane.xlu2 %627 }
 0x261   :  { %v705_v15 = vpop.permute.xlu1 %704 }
 0x262   :  { %v847_v6 = vmul.f32 %v705_v15, %v613_v2 }
 0x264   :  { %906 = vperm.xlu0 %1099, %v847_v6  }
 0x265   :  { %741 = vperm.xlu2 %1087, %v1602_v7   ;;  %v761_v29 = vpop.permute.xlu0 %760 }
 0x266   :  { %v856_v25 = vmul.f32 %v761_v29, %v640_v63 }
 0x267   :  { %1100 = vset.pattern.permute.xlu1 %v1814_v8 }
 0x268   :  { %v637_v0 = vpop.xlane.xlu2 %636 }
 0x26d   :  { %1089 = vset.pattern.permute.xlu2 %v1326_v58  ;;  %v792_v14 = vpop.permute.xlu0 %791 }
 0x270   :  { %v646_v10 = vpop.xlane.xlu2 %645 }
 0x271   :  { %v717_v20 = vpop.permute.xlu1 %716 }
 0x272   :  { %v849_v46 = vmul.f32 %v717_v20, %v1691_v59 }
 0x275   :  { %754 = vperm.xlu2 %1089, %v1630_v48  }
 0x278   :  { %v1700_v19 = vpop.xlane.xlu2 %654 }
 0x27d   :  { %1091 = vset.pattern.permute.xlu2 %v1314_v52 }
 0x280   :  { %v1703_v57 = vpop.xlane.xlu2 %663 }
 0x281   :  { %v736_v35 = vpop.permute.xlu1 %735 }
 0x282   :  { %v852_v54 = vmul.f32 %v736_v35, %v1694_v31 }
 0x285   :  { %773 = vperm.xlu2 %1091, %v1643_v16  }
 0x288   :  { %v680_v7 = vpop.permute.xlu2 %679 }
 0x289   :  { %v843_v55 = vmul.f32 %v680_v7, %v601_v61 }
 0x28b   :  { %894 = vperm.xlu1 %1100, %v843_v55  }
 0x28d   :  { %1093 = vset.pattern.permute.xlu2 %v1816_v1  ;;  %v851_v1 = vmul.f32 %v730_v33, %v1666_v62 }
 0x290   :  { %v699_v48 = vpop.permute.xlu2 %698 }
 0x291   :  { %v846_v23 = vmul.f32 %v699_v48, %v610_v17 }
 0x293   :  { %900 = vperm.xlu1 %1100, %v845_v24  }
 0x295   :  { %785 = vperm.xlu2 %1093, %v1643_v16   ;;  %v749_v16 = vpop.permute.xlu1 %748 }
 0x29d   :  { %1096 = vset.pattern.permute.xlu2 %v1326_v58  ;;  %v854_v58 = vmul.f32 %v749_v16, %v1669_v38 }
 0x29f   :  { %v711_v52 = vpop.permute.xlu2 %710 }
 0x2a0   :  { %v848_v26 = vmul.f32 %v711_v52, %v1659_v37 }
 0x2a1   :  { %v767_v3 = vpop.permute.xlu1 %766 }
 0x2a2   :  { %909 = vperm.xlu1 %1100, %v848_v26   ;;  %v857_v43 = vmul.f32 %v767_v3, %v1672_v42 }
 0x2a5   :  { %804 = vperm.xlu2 %1096, %v793_v27  }
 0x2aa   :  { %918 = vperm.xlu1 %1100, %v851_v1  }
 0x2ad   :  { %1098 = vset.pattern.permute.xlu2 %v1818_v22 }
 0x2af   :  { %v724_v9 = vpop.permute.xlu2 %723 }
 0x2b0   :  { %v850_v13 = vmul.f32 %v724_v9, %v622_v53 }
 0x2b1   :  { %v780_v37 = vpop.permute.xlu1 %779 }
 0x2b2   :  { %915 = vperm.xlu0 %1099, %v850_v13   ;;  %v859_v60 = vmul.f32 %v780_v37, %v649_v44 }
 0x2b5   :  { %816 = vperm.xlu2 %1098, %v793_v27   ;;  %v861_v27 = vmul.f32 %v792_v14, %v1700_v19 }
 0x2b6   :  { %v892_v15 = vpop.permute.xlu0 %891 }
 0x2b7   :  { %v962_v33 = vperm.slane %v892_v15, %v1546_v12 }
 0x2ba   :  { %927 = vperm.xlu0 %1099, %v854_v58  }
 0x2bd   :  { %1101 = vset.pattern.permute.xlu2 %v1814_v8 }
 0x2be   :  { %897 = vperm.xlu2 %1101, %v844_v47  }
 0x2bf   :  { %v742_v22 = vpop.permute.xlu2 %741 }
 0x2c0   :  { %v853_v8 = vmul.f32 %v742_v22, %v631_v11 }
 0x2c1   :  { %v799_v62 = vpop.permute.xlu1 %798 }
 0x2c2   :  { %933 = vperm.xlu0 %1099, %v856_v25   ;;  %v862_v38 = vmul.f32 %v799_v62, %v658_v4 }
 0x2c6   :  { %903 = vperm.xlu2 %1101, %v846_v23  }
 0x2ca   :  { %936 = vperm.xlu0 %1099, %v857_v43  }
 0x2ce   :  { %912 = vperm.xlu2 %1101, %v849_v46  }
 0x2cf   :  { %v755_v56 = vpop.permute.xlu2 %754 }
 0x2d0   :  { %v855_v51 = vmul.f32 %v755_v56, %v637_v0 }
 0x2d1   :  { %v811_v34 = vpop.permute.xlu1 %810 }
 0x2d2   :  { %930 = vperm.xlu1 %1100, %v855_v51   ;;  %v864_v50 = vmul.f32 %v811_v34, %v1703_v57 }
 0x2d6   :  { %921 = vperm.xlu2 %1101, %v852_v54   ;;  %v907_v0 = vpop.permute.xlu0 %906 }
 0x2d7   :  { %v970_v1 = vperm.slane %v907_v0, %v1552_v28 }
 0x2de   :  { %924 = vperm.xlu2 %1101, %v853_v8  }
 0x2df   :  { %v774_v49 = vpop.permute.xlu2 %773 }
 0x2e0   :  { %v858_v32 = vmul.f32 %v774_v49, %v646_v10 }
 0x2e2   :  { %939 = vperm.xlu1 %1100, %v858_v32  }
 0x2e6   :  { %942 = vperm.xlu2 %1101, %v859_v60  }
 0x2ee   :  { %951 = vperm.xlu2 %1101, %v862_v38  }
 0x2ef   :  { %v786_v42 = vpop.permute.xlu2 %785 }
 0x2f0   :  { %v860_v5 = vmul.f32 %v786_v42, %v1676_v18 }
 0x2f2   :  { %945 = vperm.xlu1 %1100, %v860_v5  }
 0x2f6   :  { %957 = vperm.xlu2 %1101, %v864_v50  }
 0x2fa   :  { %948 = vperm.xlu1 %1100, %v861_v27  }
 0x2fd   :  { %v895_v2 = vpop.permute.xlu1 %894 }
 0x2fe   :  { %v963_v52 = vperm.slane %v895_v2, %v1552_v28 }
 0x2ff   :  { %v805_v17 = vpop.permute.xlu2 %804 }
 0x300   :  { %v863_v61 = vmul.f32 %v805_v17, %v1680_v41  ;;  %v964_v13 = vsel %vm506_vm1, %v963_v52, %v962_v33 }
 0x302   :  { %954 = vperm.xlu0 %1099, %v863_v61  }
 0x305   :  { %v901_v6 = vpop.permute.xlu1 %900 }
 0x306   :  { %v967_v16 = vperm.slane %v901_v6, %v1549_v40 }
 0x30f   :  { %v817_v59 = vpop.permute.xlu2 %816 }
 0x310   :  { %v865_v36 = vmul.f32 %v817_v59, %v1709_v45 }
 0x312   :  { %960 = vperm.xlu0 %1099, %v865_v36  }
 0x314   :  { %v910_v10 = vpop.permute.xlu1 %909 }
 0x315   :  { %v972_v29 = vperm.slane %v910_v10, %v1555_v30 }
 0x318   :  { %v898_v31 = vpop.permute.xlu2 %897 }
 0x319   :  { %v965_v35 = vperm.slane %v898_v31, %v1555_v30 }
 0x31b   :  { %v966_v54 = vsel %vm510_vm2, %v965_v35, %v964_v13 }
 0x31c   :  { %v919_v19 = vpop.permute.xlu1 %918  ;;  %v968_v61 = vsel %vm514_vm3, %v967_v16, %v966_v54 }
 0x31d   :  { %v977_v43 = vperm.slane %v919_v19, %v1552_v28 }
 0x320   :  { %v904_v18 = vpop.permute.xlu2 %903 }
 0x321   :  { %v969_v26 = vperm.slane %v904_v18, %v1546_v12 }
 0x323   :  { %v971_v39 = vsel %vm506_vm1, %v970_v1, %v969_v26 }
 0x324   :  { %v916_v11 = vpop.permute.xlu0 %915  ;;  %v973_v8 = vsel %vm510_vm2, %v972_v29, %v971_v39 }
 0x325   :  { %v976_v58 = vperm.slane %v916_v11, %v1546_v12 }
 0x327   :  { %v978_v32 = vsel %vm506_vm1, %v977_v43, %v976_v58 }
 0x328   :  { %v913_v53 = vpop.permute.xlu2 %912 }
 0x329   :  { %v974_v25 = vperm.slane %v913_v53, %v1549_v40 }
 0x32b   :  { %v975_v42 = vsel %vm514_vm3, %v974_v25, %v973_v8 }
 0x32c   :  { %v928_v57 = vpop.permute.xlu0 %927  ;;  %v1004_v31 = vsel %vm551_vm4, %v975_v42, %v968_v61 }
 0x32d   :  { %v983_v9 = vperm.slane %v928_v57, %v1546_v12 }
 0x330   :  { %v922_v63 = vpop.permute.xlu2 %921 }
 0x331   :  { %v979_v23 = vperm.slane %v922_v63, %v1555_v30 }
 0x333   :  { %v980_v5 = vsel %vm510_vm2, %v979_v23, %v978_v32 }
 0x334   :  { %v934_v41 = vpop.permute.xlu0 %933 }
 0x335   :  { %v986_v46 = vperm.slane %v934_v41, %v1555_v30 }
 0x338   :  { %v925_v7 = vpop.permute.xlu2 %924 }
 0x339   :  { %v981_v56 = vperm.slane %v925_v7, %v1549_v40 }
 0x33b   :  { %v982_v27 = vsel %vm514_vm3, %v981_v56, %v980_v5 }
 0x33c   :  { %v937_v48 = vpop.permute.xlu0 %936  ;;  %v1005_v6 = vsel %vm553_vm5, %v982_v27, %v1004_v31 }
 0x33d   :  { %v988_v34 = vperm.slane %v937_v48, %v1549_v40 }
 0x340   :  { %v943_v24 = vpop.permute.xlu2 %942 }
 0x341   :  { %v991_v60 = vperm.slane %v943_v24, %v1552_v28 }
 0x344   :  { %v931_v44 = vpop.permute.xlu1 %930 }
 0x345   :  { %v984_v20 = vperm.slane %v931_v44, %v1552_v28 }
 0x347   :  { %v985_v3 = vsel %vm506_vm1, %v984_v20, %v983_v9 }
 0x348   :  { %v952_v45 = vpop.permute.xlu2 %951  ;;  %v987_v62 = vsel %vm510_vm2, %v986_v46, %v985_v3 }
 0x349   :  { %v997_v50 = vperm.slane %v952_v45, %v1546_v12  ;;  %v989_v36 = vsel %vm514_vm3, %v988_v34, %v987_v62 }
 0x34a   :  { %v1006_v10 = vsel %vm555_vm6, %v989_v36, %v1005_v6 }
 0x350   :  { %v958_v14 = vpop.permute.xlu2 %957 }
 0x351   :  { %v1000_v2 = vperm.slane %v958_v14, %v1555_v30 }
 0x354   :  { %v940_v55 = vpop.permute.xlu1 %939 }
 0x355   :  { %v990_v51 = vperm.slane %v940_v55, %v1546_v12 }
 0x357   :  { %v992_v17 = vsel %vm506_vm1, %v991_v60, %v990_v51 }
 0x364   :  { %v946_v4 = vpop.permute.xlu1 %945 }
 0x365   :  { %v993_v37 = vperm.slane %v946_v4, %v1555_v30  ;;  %v1014_v30 = vperm.slane %v1684_v21, %v1546_v12 }
 0x36c   :  { %v949_v22 = vpop.permute.xlu1 %948 }
 0x36d   :  { %v995_v38 = vperm.slane %v949_v22, %v1549_v40 }
 0x374   :  { %v955_v47 = vpop.permute.xlu0 %954 }
 0x375   :  { %v998_v49 = vperm.slane %v955_v47, %v1552_v28  ;;  %v994_v28 = vsel %vm510_vm2, %v993_v37, %v992_v17 }
 0x376   :  { %v996_v18 = vsel %vm514_vm3, %v995_v38, %v994_v28 }
 0x377   :  { %v999_v59 = vsel %vm506_vm1, %v998_v49, %v997_v50  ;;  %v1007_v63 = vsel %vm557_vm7, %v996_v18, %v1006_v10 }
 0x378   :  { %v1001_v53 = vsel %vm510_vm2, %v1000_v2, %v999_v59 }
 0x384   :  { %v961_v15 = vpop.permute.xlu0 %960 }
 0x385   :  { %v1002_v0 = vperm.slane %v961_v15, %v1549_v40 }
 0x387   :  { %v1003_v11 = vsel %vm514_vm3, %v1002_v0, %v1001_v53 }
 0x388   :  { %v1008_v19 = vsel %vm559_vm8, %v1003_v11, %v1007_v63 }
 0x389   :  { %v1010_v57 = vsel %vm562_vm9, %v1008_v19, 0.0 }
 0x38a   :  { %1011 = vadd.xlane.f32.xlu1 %v1010_v57 }
 0x3fd   :  { %v1012_v40 = vpop.xlane.xlu1 %1011 }
 0x3fe   :  { %v1017_v7 = vperm.slane %v1012_v40, %v1546_v12 }
 0x400   :  { %v1020_v44 = vsel %vm1019_vm10, %v1014_v30, %v1017_v7 }
 0x401   :  { %1022 = vst.msk [vmem:[#allocation8] sm:$0x3] %vm1021_vm11, %v1020_v44 }
 0x402   :  { %1033 = dma.vmem_to_hbm [thread:$0]  %s1029_s2, 32, %s1031_s5, [#allocation4]  }
 0x403   :  { %1202 = dma.done.wait [#allocation4], 32  }
 0x404   :  { %1203 = vsyncadd [#allocation4], 4294967264 }
 0x405   :  { %1038 = vsyncpa [#allocation3], 1 }
 0x406   :  { %1039 = vsyncpa [#allocation6], 1 }
 0x407   :  { %1040 = vsyncpa [#allocation4], 1 }

</bundles_post_ra>
